<compile_context>
chip_gen: v7x
topology: tpu7x:2x2x1
jax: 0.10.0
libtpu: 0.0.40
codegen_flags: <defaults>
</compile_context>

<pallas_src>
import jax
import jax.numpy as jnp
from jax.experimental import pallas as pl
from jax.experimental.pallas import tpu as pltpu


# ---------------------------------------------------------------------------
# In-kernel helpers
# ---------------------------------------------------------------------------

def _softmax_lanes(scores):
    """Numerically stable, exact softmax over the last (lane) axis of (TB, S)."""
    m = jnp.max(scores, axis=-1, keepdims=True)
    e = jnp.exp(scores - m)
    denom = jnp.sum(e, axis=-1, keepdims=True)
    # Exact reciprocal: the weights must sum to 1 (approx=True broke the
    # reference comparison); denom is only (TB, 1) so this is negligible.
    return e * pl.reciprocal(denom, approx=False)


def _attend(enc, w):
    """Context from (TB, S, E) encoder tile and (TB, S) weights on the VPU."""
    return jnp.sum(w[:, :, None] * enc, axis=1)          # (TB, E)


# ---------------------------------------------------------------------------
# Kernels: one grid step == one batch tile of TB rows.
# ---------------------------------------------------------------------------

def luong_dot_kernel(dec_ref, enc_ref, ctx_ref, attn_ref):
    enc = enc_ref[...].astype(jnp.float32)                # (TB, S, E)
    dec = dec_ref[...].astype(jnp.float32)                # (TB, D), D == E
    scores = jnp.sum(enc * dec[:, None, :], axis=-1)      # (TB, S)  VPU
    w = _softmax_lanes(scores)
    attn_ref[...] = w.astype(attn_ref.dtype)
    ctx_ref[...] = _attend(enc, w).astype(ctx_ref.dtype)


def luong_general_kernel(dec_ref, enc_ref, wa_t_ref, ctx_ref, attn_ref):
    enc = enc_ref[...].astype(jnp.float32)                # (TB, S, E)
    dec = dec_ref[...]                                    # (TB, D)
    # (enc @ Wa) . dec == enc . (dec @ Wa^T): project the small decoder vector
    # instead of the whole encoder block (O(B*E*D) instead of O(B*S*E*D)).
    q = jnp.dot(dec, wa_t_ref[...],
                preferred_element_type=jnp.float32)       # (TB, E)
    scores = jnp.sum(enc * q[:, None, :], axis=-1)        # (TB, S)  VPU
    w = _softmax_lanes(scores)
    attn_ref[...] = w.astype(attn_ref.dtype)
    ctx_ref[...] = _attend(enc, w).astype(ctx_ref.dtype)


def bahdanau_kernel(dec_ref, enc_ref, wa_dec_ref, wa_enc_ref, wa_b_ref, v_ref,
                    ctx_ref, attn_ref):
    enc = enc_ref[...].astype(jnp.float32)                # (TB, S, E)
    dec = dec_ref[...]                                    # (TB, D)
    tb, s, e = enc.shape
    d = wa_dec_ref.shape[1]
    # concat([dec_expanded, enc]) @ Wa  ==  dec @ Wa[:D] + enc @ Wa[D:]
    dec_part = jnp.dot(dec, wa_dec_ref[...],
                       preferred_element_type=jnp.float32)             # (TB, D)
    # Single 2-D MXU matmul over the flattened encoder tile: no broadcast copy
    # of the (E, D) weight and no tiny batched matmul pushes.
    enc_part = jnp.dot(enc.reshape(tb * s, e), wa_enc_ref[...],
                       preferred_element_type=jnp.float32).reshape(tb, s, d)
    # Fuse decoder part + bias into the tanh argument -> single live (TB,S,D)
    # intermediate feeding the EUP.
    energy = jnp.tanh(enc_part + (dec_part + wa_b_ref[...])[:, None, :])
    # scores = energy . v as a VPU broadcast-multiply + lane reduce.
    scores = jnp.sum(energy * v_ref[...][None, :, :], axis=-1)          # (TB, S)
    w = _softmax_lanes(scores)
    attn_ref[...] = w.astype(attn_ref.dtype)
    ctx_ref[...] = _attend(enc, w).astype(ctx_ref.dtype)


# ---------------------------------------------------------------------------
# Tile selection (VMEM- and pipeline-aware)
# ---------------------------------------------------------------------------

def _vmem_capacity_bytes():
    try:
        return int(pltpu.get_tpu_info().vmem_capacity_bytes)
    except Exception:
        return 64 * 1024 * 1024          # conservative fallback (v7x per-TC)


def _vmem_tile_bytes(tb, S, E, D, itemsize, method):
    """Approximate VMEM footprint of one grid step (double-buffered I/O)."""
    enc = 2 * tb * S * E * itemsize                  # encoder block (x2 buffers)
    io = 2 * tb * (D + E + S) * itemsize             # dec in + ctx/attn out
    inter = 4 * tb * S * 4                           # scores / weights (f32)
    if method == 'Bahdanau_concat':
        inter += 2 * tb * S * D * 4                  # enc_part / energy (f32)
        inter += 2 * (D * D + E * D + 2 * D) * 4     # resident weights
    elif method == 'Luong_general':
        inter += 2 * D * E * 4
    return enc + io + inter


def _pick_batch_tile(B, S, E, D, itemsize, method):
    """Batch tile: multiple of 8 (sublane aligned), sized so one double-buffered
    step fits ~55% of physical VMEM, and capped so the grid has >= 2-4 steps
    (keeps the pipeline double-buffered and lets v7x shard across its TCs)."""
    budget = int(0.55 * _vmem_capacity_bytes())
    if B <= 8:
        return B
    max_tb = (B // 8) * 8
    target_grid = 4 if B >= 32 else 2
    cap = max(8, (B // target_grid) // 8 * 8)
    tb = min(max_tb, cap)
    while tb > 8 and _vmem_tile_bytes(tb, S, E, D, itemsize, method) > budget:
        tb -= 8
    # TODO(synk): if even TB=8 exceeds the budget (very large S*E, especially
    # on v7x's 64 MiB VMEM), add an S-axis grid dimension with an online
    # softmax (running max / sum / ctx accumulators, pl.when init/finalize).
    return tb


# ---------------------------------------------------------------------------
# Wrapper
# ---------------------------------------------------------------------------

def attention_pallas(method, decoder_hidden, encoder_outputs, params=None,
                     batch_tile=None):
    """Returns (context (B, E), attention_weights (B, S))."""
    B, S, E = encoder_outputs.shape
    D = decoder_hidden.shape[1]
    dtype = encoder_outputs.dtype
    itemsize = jnp.dtype(dtype).itemsize

    TB = batch_tile if batch_tile is not None else _pick_batch_tile(
        B, S, E, D, itemsize, method)
    if TB < B and TB % 8 != 0:
        raise ValueError("batch tile must be a multiple of 8 (or the full batch)")

    # Pad the batch so the grid covers it exactly; padded rows are zeros
    # (softmax of all-zero scores is well defined) and are sliced off below.
    B_pad = -(-B // TB) * TB
    dec = decoder_hidden
    enc = encoder_outputs
    if B_pad != B:
        dec = jnp.pad(dec, ((0, B_pad - B), (0, 0)))
        enc = jnp.pad(enc, ((0, B_pad - B), (0, 0), (0, 0)))
    grid = (B_pad // TB,)

    dec_spec = pl.BlockSpec((TB, D), lambda b: (b, 0))
    enc_spec = pl.BlockSpec((TB, S, E), lambda b: (b, 0, 0))

    def const_spec(arr):
        nd = arr.ndim
        # index_map always returns block 0 -> weight stays VMEM-resident.
        return pl.BlockSpec(arr.shape, lambda b, _nd=nd: (0,) * _nd)

    out_shape = (jax.ShapeDtypeStruct((B_pad, E), dtype),
                 jax.ShapeDtypeStruct((B_pad, S), dtype))
    out_specs = (pl.BlockSpec((TB, E), lambda b: (b, 0)),
                 pl.BlockSpec((TB, S), lambda b: (b, 0)))

    if method == 'Luong_dot':
        if E != D:
            raise ValueError('Luong_dot requires encoder_hidden_size == decoder_hidden_size')
        kernel = luong_dot_kernel
        consts = ()
    elif method == 'Luong_general':
        wa_t = params['wa'].T                   # (D, E): fold projection onto dec
        kernel = luong_general_kernel
        consts = (wa_t,)
    elif method == 'Bahdanau_concat':
        wa_dec = params['wa'][:D]               # (D, D) decoder part of concat
        wa_enc = params['wa'][D:]               # (E, D) encoder part of concat
        wa_b = params['wa_b'].reshape(1, D)     # (1, D)
        v_row = params['v'].reshape(1, D)       # (1, D)
        kernel = bahdanau_kernel
        consts = (wa_dec, wa_enc, wa_b, v_row)
    else:
        raise ValueError('Invalid attention method')

    in_specs = [dec_spec, enc_spec] + [const_spec(c) for c in consts]
    args = (dec, enc) + consts

    vmem_limit = min(
        int(0.9 * _vmem_capacity_bytes()),
        max(32 * 1024 * 1024,
            2 * _vmem_tile_bytes(TB, S, E, D, itemsize, method)))

    ctx, attn = pl.pallas_call(
        kernel,
        grid=grid,
        in_specs=in_specs,
        out_specs=out_specs,
        out_shape=out_shape,
        compiler_params=pltpu.CompilerParams(
            dimension_semantics=("parallel",),
            vmem_limit_bytes=vmem_limit),
    )(*args)

    if B_pad != B:
        ctx, attn = ctx[:B], attn[:B]
    return ctx, attn


# ---------------------------------------------------------------------------
# Pure-JAX reference (mirrors the PyTorch forward)
# ---------------------------------------------------------------------------

def attention_ref(method, dec, enc, params=None):
    if method == 'Luong_dot':
        scores = jnp.einsum('bse,be->bs', enc, dec)
    elif method == 'Luong_general':
        scores = jnp.einsum('bsd,bd->bs', enc @ params['wa'], dec)
    elif method == 'Bahdanau_concat':
        B, S, _ = enc.shape
        dec_e = jnp.broadcast_to(dec[:, None, :], (B, S, dec.shape[1]))
        comb = jnp.concatenate([dec_e, enc], axis=2)
        energy = jnp.tanh(comb @ params['wa'] + params['wa_b'])
        scores = (energy @ params['v'])[..., 0]
    w = jax.nn.softmax(scores, axis=1)
    ctx = jnp.einsum('bs,bse->be', w, enc)
    return ctx, w


if __name__ == "__main__":
    # Small shapes consistent with the module: batch=8, seq=8, hidden=32
    B, S, E, D = 8, 8, 32, 32        # Luong_dot requires E == D
    key = jax.random.PRNGKey(0)
    k1, k2, k3, k4, k5 = jax.random.split(key, 5)

    decoder_hidden = jax.random.normal(k1, (B, D), jnp.float32)
    encoder_outputs = jax.random.normal(k2, (B, S, E), jnp.float32)

    # Deterministic synthetic parameters (stored as (in_features, out_features)).
    params = {
        'Luong_general': {'wa': 0.1 * jax.random.normal(k3, (E, D), jnp.float32)},
        'Bahdanau_concat': {
            'wa': 0.1 * jax.random.normal(k4, (D + E, D), jnp.float32),
            'wa_b': 0.01 * jnp.arange(D, dtype=jnp.float32),
            'v': 0.1 * jax.random.normal(k5, (D, 1), jnp.float32),
        },
    }

    cases = [
        ('Luong_dot', None),
        ('Luong_general', params['Luong_general']),
        ('Bahdanau_concat', params['Bahdanau_concat']),
    ]

    for method, p in cases:
        ctx, attn = attention_pallas(method, decoder_hidden, encoder_outputs, p)
        jax.block_until_ready((ctx, attn))
        ctx_r, attn_r = attention_ref(method, decoder_hidden, encoder_outputs, p)
        assert jnp.allclose(ctx, ctx_r, atol=1e-4, rtol=1e-4), f"{method} context mismatch"
        assert jnp.allclose(attn, attn_r, atol=1e-4, rtol=1e-4), f"{method} weights mismatch"

    print("KERNEL_OK")
</pallas_src>

<mosaic_0001>
module attributes {stable_mosaic.version = 11 : i64} {
  func.func @luong_dot_kernel(%arg0: i32, %arg1: memref<8x32xf32, #tpu.memory_space<vmem>>, %arg2: memref<8x8x32xf32, #tpu.memory_space<vmem>>, %arg3: memref<8x32xf32, #tpu.memory_space<vmem>>, %arg4: memref<8x8xf32, #tpu.memory_space<vmem>>) attributes {dimension_semantics = [#tpu.dimension_semantics<parallel>], iteration_bounds = array<i64: 1>, scalar_prefetch = 0 : i64, scratch_operands = 0 : i64, tpu.core_type = #tpu.core_type<tc>, window_params = [{transform_indices = @transform_0, window_bounds = array<i64: 8, 32>}, {transform_indices = @transform_1, window_bounds = array<i64: 8, 8, 32>}, {transform_indices = @transform_2, window_bounds = array<i64: 8, 32>}, {transform_indices = @transform_3, window_bounds = array<i64: 8, 8>}]} {
    %c0 = arith.constant 0 : index
    %c0_0 = arith.constant 0 : index
    %c0_1 = arith.constant 0 : index
    %0 = vector.load %arg2[%c0, %c0_0, %c0_1] : memref<8x8x32xf32, #tpu.memory_space<vmem>>, vector<8x8x32xf32>
    %c0_2 = arith.constant 0 : index
    %c0_3 = arith.constant 0 : index
    %1 = vector.load %arg1[%c0_2, %c0_3] : memref<8x32xf32, #tpu.memory_space<vmem>>, vector<8x32xf32>
    %2 = vector.shape_cast %1 : vector<8x32xf32> to vector<8x1x32xf32>
    %3 = vector.broadcast %2 : vector<8x1x32xf32> to vector<8x8x32xf32>
    %4 = arith.mulf %0, %3 : vector<8x8x32xf32>
    %cst = arith.constant dense<0.000000e+00> : vector<8x8xf32>
    %5 = vector.multi_reduction <add>, %4, %cst [2] : vector<8x8x32xf32> to vector<8x8xf32>
    %cst_4 = arith.constant dense<0xFF800000> : vector<8xf32>
    %6 = vector.multi_reduction <maximumf>, %5, %cst_4 [1] : vector<8x8xf32> to vector<8xf32>
    %7 = vector.shape_cast %6 : vector<8xf32> to vector<8x1xf32>
    %8 = vector.broadcast %7 : vector<8x1xf32> to vector<8x8xf32>
    %9 = arith.subf %5, %8 : vector<8x8xf32>
    %10 = math.exp %9 : vector<8x8xf32>
    %cst_5 = arith.constant dense<0.000000e+00> : vector<8xf32>
    %11 = vector.multi_reduction <add>, %10, %cst_5 [1] : vector<8x8xf32> to vector<8xf32>
    %12 = vector.shape_cast %11 : vector<8xf32> to vector<8x1xf32>
    %13 = tpu.reciprocal %12 : vector<8x1xf32> -> vector<8x1xf32>
    %14 = vector.broadcast %13 : vector<8x1xf32> to vector<8x8xf32>
    %15 = arith.mulf %10, %14 : vector<8x8xf32>
    %c0_6 = arith.constant 0 : index
    %c0_7 = arith.constant 0 : index
    %16 = vector.load %arg4[%c0_6, %c0_7] : memref<8x8xf32, #tpu.memory_space<vmem>>, vector<8x8xf32>
    tpu.vector_store %arg4[%c0_6, %c0_7], %15 {strides = array<i32>} : memref<8x8xf32, #tpu.memory_space<vmem>>, vector<8x8xf32>,
    %17 = vector.shape_cast %15 : vector<8x8xf32> to vector<8x8x1xf32>
    %18 = vector.broadcast %17 : vector<8x8x1xf32> to vector<8x8x32xf32>
    %19 = arith.mulf %18, %0 : vector<8x8x32xf32>
    %cst_8 = arith.constant dense<0.000000e+00> : vector<8x32xf32>
    %20 = vector.multi_reduction <add>, %19, %cst_8 [1] : vector<8x8x32xf32> to vector<8x32xf32>
    %c0_9 = arith.constant 0 : index
    %c0_10 = arith.constant 0 : index
    %21 = vector.load %arg3[%c0_9, %c0_10] : memref<8x32xf32, #tpu.memory_space<vmem>>, vector<8x32xf32>
    tpu.vector_store %arg3[%c0_9, %c0_10], %20 {strides = array<i32>} : memref<8x32xf32, #tpu.memory_space<vmem>>, vector<8x32xf32>,
    return
  }
  func.func @transform_0(%arg0: i32) -> (i32, i32) {
    %c0_i32 = arith.constant 0 : i32
    %c0_i32_0 = arith.constant 0 : i32
    return %arg0, %c0_i32 : i32, i32
  }
  func.func @transform_1(%arg0: i32) -> (i32, i32, i32) {
    %c0_i32 = arith.constant 0 : i32
    %c0_i32_0 = arith.constant 0 : i32
    %c0_i32_1 = arith.constant 0 : i32
    return %arg0, %c0_i32, %c0_i32_0 : i32, i32, i32
  }
  func.func @transform_2(%arg0: i32) -> (i32, i32) {
    %c0_i32 = arith.constant 0 : i32
    %c0_i32_0 = arith.constant 0 : i32
    return %arg0, %c0_i32 : i32, i32
  }
  func.func @transform_3(%arg0: i32) -> (i32, i32) {
    %c0_i32 = arith.constant 0 : i32
    %c0_i32_0 = arith.constant 0 : i32
    return %arg0, %c0_i32 : i32, i32
  }
}

</mosaic_0001>

<bundles_post_ra>
// kernel: tpu_custom_call.1
= control target key start
LH: loop header
LB: loop body
LE: loop exit
PB: predicated region body
PF: predicated region fallthrough
CT: control target
= control target key end

     0   :  { %9 = vsyncpa [#allocation3], 0  ;;  %s982_s0 = inlined_call_operand.hbm [shape: f32[8,32], index: 0, kind: input, shape index: {}]   ;;  %s983_s1 = inlined_call_operand.hbm [shape: f32[8,8,32], index: 1, kind: input, shape index: {}]   ;;  %s984_s2 = inlined_call_operand.hbm [shape: f32[8,32], index: 2, kind: output, shape index: {0}]   ;;  %s985_s3 = inlined_call_operand.hbm [shape: f32[8,8], index: 3, kind: output, shape index: {1}]  }
   0x1   :  { %10 = vsyncpa [#allocation6], 0 }
   0x2   :  { %11 = vsyncpa [#allocation4], 0 }
   0x3   :  { %12 = vsyncpa [#allocation9], 0  ;;  %s741_s12 = smov [#allocation2]   ;;  %s742_s14 = smov [#allocation5]  }
   0x4   :  { %s19_s13 = sshll.u32 %s741_s12, 4  ;;  %s28_s15 = sshll.u32 %s742_s14, 4  ;;  %s20_s13 = int_to_ptr.vmem [resolvable:$true] %s19_s13  ;;  %s769_s15 = int_to_ptr.vmem [resolvable:$true] %s28_s15 }
   0x5   :  { %s645_s18 = scalar_lea.hbm %s982_s0, 128 }
   0x6   :  { %p646_p0 = scmp.ne.s32.totalorder %s982_s0, %s645_s18  ;;  %p649_p1 = scmp.lt.u32.totalorder %s645_s18, %s982_s0 }
   0x8   :  { %p651_p2 = pnand %p649_p1, %p646_p0 }
   0xa   :  { %654 = shalt.err (!%p651_p2)
}
   0xb   :  { %s655_s23 = scalar_lea.vmem %s20_s13, 128  ;;  %p660_p4 = scmp.lt.s32.totalorder %s20_s13, %s20_s13 }
   0xc   :  { %p656_p3 = scmp.ne.s32.totalorder %s20_s13, %s655_s23  ;;  %p661_p5 = scmp.lt.s32.totalorder %s655_s23, %s655_s23 }
   0xe   :  { %p662_p6 = por %p661_p5, %p660_p4 }
  0x10   :  { %p663_p7 = pnand %p662_p6, %p656_p3 }
  0x12   :  { %666 = shalt.err (!%p663_p7)
}
  0x13   :  { %22 = dma.hbm_to_vmem [thread:$0]  %s982_s0, 128, %s20_s13, [#allocation3]  }
  0x14   :  { %s667_s28 = scalar_lea.hbm %s983_s1, 1024 }
  0x15   :  { %p668_p8 = scmp.ne.s32.totalorder %s983_s1, %s667_s28  ;;  %p671_p9 = scmp.lt.u32.totalorder %s667_s28, %s983_s1 }
  0x17   :  { %p673_p10 = pnand %p671_p9, %p668_p8 }
  0x19   :  { %676 = shalt.err (!%p673_p10)
}
  0x1a   :  { %s677_s6 = scalar_lea.vmem %s769_s15, 1024  ;;  %p682_p12 = scmp.lt.s32.totalorder %s769_s15, %s769_s15 }
  0x1b   :  { %p678_p11 = scmp.ne.s32.totalorder %s769_s15, %s677_s6  ;;  %p683_p13 = scmp.lt.s32.totalorder %s677_s6, %s677_s6 }
  0x1d   :  { %p684_p0 = por %p683_p13, %p682_p12 }
  0x1f   :  { %p685_p1 = pnand %p684_p0, %p678_p11 }
  0x21   :  { %688 = shalt.err (!%p685_p1)
}
  0x22   :  { %s743_s0 = smov 128   ;;  %s744_s7 = smov 8  }
  0x23   :  { %34 = dma.hbm_to_vmem [thread:$0]  %s983_s1, 1024, %s769_s15, [#allocation6], %s743_s0, %s743_s0, %s744_s7  }
  0x24   :  { %733 = dma.done.wait [#allocation3], 128  }
  0x25   :  { %734 = vsyncadd [#allocation3], 4294967168 }
  0x26   :  { %735 = dma.done.wait [#allocation6], 1024  }
  0x27   :  { %736 = vsyncadd [#allocation6], 4294966272  ;;  %v55_v0 = vlaneseq  ;;  %v745_v1 = vmov 1966171168   ;;  %v49_v8 = vld [vmem:[#allocation2] sm:$0xff]  ;;  %v809_v15 = vld [vmem:[#allocation5] sm:$0xff] }
  0x28   :  { %v53_v2 = vunpack.c.l.s4 %v745_v1  ;;  %v51_v9 = vcombine.high %v49_v8, %v49_v8  ;;  %vm148_vm0 = vcmask 261120   ;;  %v812_v20 = vld [vmem:[#allocation5 + $0x10] sm:$0xff]  ;;  %v814_v21 = vld [vmem:[#allocation5 + $0x8] sm:$0xff]  ;;  %v819_v27 = vld [vmem:[#allocation5 + $0x20] sm:$0xff]  ;;  %vm215_vm1 = vcmask 1041409   ;;  %s747_s1 = smov [#allocation8]  }
  0x29   :  { %v800_v3 = vshrl.u32 %v55_v0, 7  ;;  %v182_v4 = vand.u32 127, %v55_v0  ;;  %v821_v28 = vld [vmem:[#allocation5 + $0x18] sm:$0xff]  ;;  %v829_v37 = vld [vmem:[#allocation5 + $0x28] sm:$0xff]  ;;  %v836_v44 = vld [vmem:[#allocation5 + $0x30] sm:$0xff]  ;;  %vm217_vm2 = vcmask 1042434  }
  0x2a   :  { %v54_v5 = vunpack.c.0.s8 %v53_v2  ;;  %v841_v48 = vld [vmem:[#allocation5 + $0x38] sm:$0xff]  ;;  %vm219_vm3 = vcmask 1043459   ;;  %vm221_vm4 = vcmask 1044484   ;;  %vm223_vm5 = vcmask 1045509   ;;  %s602_s10 = sshll.u32 %s747_s1, 4  ;;  %s603_s10 = int_to_ptr.vmem [resolvable:$true] %s602_s10 }
  0x2b   :  { %v803_v6 = vsub.s32 %v182_v4, %v800_v3  ;;  %v807_v11 = vsub.s32 0, %v800_v3  ;;  %vm225_vm6 = vcmask 1046534   ;;  %vm227_vm7 = vcmask 1047559   ;;  %s689_s11 = scalar_lea.vmem %s603_s10, 128  ;;  %p694_p3 = scmp.lt.s32.totalorder %s603_s10, %s603_s10 }
  0x2c   :  { %v57_v7 = vsub.s32 %v54_v5, %v800_v3  ;;  %vm230_vm8 = vcmask 64512   ;;  %p690_p2 = scmp.ne.s32.totalorder %s603_s10, %s689_s11  ;;  %p695_p4 = scmp.lt.s32.totalorder %s689_s11, %s689_s11 }
  0x2e   :  { %v58_v10 = vrot.slane %v49_v8, %v57_v7  ;;  %v65_v14 = vrot.slane %v51_v9, %v57_v7  ;;  %p696_p5 = por %p695_p4, %p694_p3 }
  0x30   :  { %v74_v12 = vrot.slane %v58_v10, %v57_v7  ;;  %v66_v13 = vcombine.high %v58_v10, %v58_v10  ;;  %v81_v19 = vrot.slane %v65_v14, %v57_v7  ;;  %v67_v22 = vcombine.high %v65_v14, %v65_v14  ;;  %p697_p6 = pnand %p696_p5, %p690_p2 }
  0x32   :  { %v103_v16 = vrot.slane %v74_v12, %v807_v11  ;;  %v96_v17 = vcombine.high %v74_v12, %v74_v12  ;;  %v88_v18 = vrot.slane %v66_v13, %v57_v7  ;;  %v119_v29 = vrot.slane %v81_v19, %v807_v11 }
  0x33   :  { %v95_v30 = vrot.slane %v67_v22, %v57_v7  ;;  %v97_v31 = vcombine.high %v81_v19, %v81_v19  ;;  %v746_v19 = vmov 0   ;;  %v241_v22 = vsub.s32 1, %v800_v3 }
  0x34   :  { %v140_v23 = vmul.f32 %v103_v16, %v809_v15  ;;  %v111_v24 = vrot.slane %v96_v17, %v807_v11  ;;  %v107_v25 = vrot.slane %v88_v18, %v807_v11  ;;  %v98_v26 = vcombine.high %v88_v18, %v88_v18  ;;  %625 = vset.pattern.permute.xlu0 %v746_v19 }
  0x35   :  { %v144_v36 = vmul.f32 %v119_v29, %v819_v27  ;;  %v123_v38 = vrot.slane %v95_v30, %v807_v11  ;;  %v99_v39 = vcombine.high %v95_v30, %v95_v30  ;;  %v127_v43 = vrot.slane %v97_v31, %v807_v11  ;;  %624 = vset.pattern.permute.xlu1 %v746_v19 }
  0x36   :  { %v149_v32 = vsel %vm148_vm0, %v140_v23, 0.0  ;;  %v142_v33 = vmul.f32 %v111_v24, %v812_v20  ;;  %v141_v34 = vmul.f32 %v107_v25, %v814_v21  ;;  %v115_v35 = vrot.slane %v98_v26, %v807_v11 }
  0x37   :  { %150 = vadd.xlane.f32.xlu0 %v149_v32  ;;  %v145_v46 = vmul.f32 %v123_v38, %v829_v37  ;;  %v131_v47 = vrot.slane %v99_v39, %v807_v11  ;;  %v161_v49 = vsel %vm148_vm0, %v144_v36, 0.0  ;;  %v146_v50 = vmul.f32 %v127_v43, %v836_v44 }
  0x38   :  { %v155_v40 = vsel %vm148_vm0, %v142_v33, 0.0  ;;  %v152_v41 = vsel %vm148_vm0, %v141_v34, 0.0  ;;  %v143_v42 = vmul.f32 %v115_v35, %v821_v28  ;;  %v245_v23 = vsub.s32 2, %v800_v3 }
  0x39   :  { %156 = vadd.xlane.f32.xlu1 %v155_v40  ;;  %v164_v51 = vsel %vm148_vm0, %v145_v46, 0.0  ;;  %v147_v52 = vmul.f32 %v131_v47, %v841_v48  ;;  %v167_v53 = vsel %vm148_vm0, %v146_v50, 0.0  ;;  %v249_v24 = vsub.s32 3, %v800_v3 }
  0x3a   :  { %v158_v45 = vsel %vm148_vm0, %v143_v42, 0.0  ;;  %v253_v31 = vsub.s32 4, %v800_v3  ;;  %v257_v39 = vsub.s32 5, %v800_v3  ;;  %v261_v43 = vsub.s32 6, %v800_v3 }
  0x3b   :  { %153 = vadd.xlane.f32.xlu0 %v152_v41  ;;  %v170_v54 = vsel %vm148_vm0, %v147_v52, 0.0 }
  0x3d   :  { %159 = vadd.xlane.f32.xlu1 %v158_v45 }
  0x3f   :  { %162 = vadd.xlane.f32.xlu0 %v161_v49  ;;  %v265_v49 = vsub.s32 7, %v800_v3 }
  0x41   :  { %165 = vadd.xlane.f32.xlu1 %v164_v51 }
  0x43   :  { %168 = vadd.xlane.f32.xlu0 %v167_v53 }
  0x45   :  { %171 = vadd.xlane.f32.xlu1 %v170_v54 }
  0xc4   :  { %v151_v55 = vpop.xlane.xlu0 %150 }
  0xc5   :  { %v186_v58 = vrot.slane %v151_v55, %v803_v6 }
  0xc6   :  { %v157_v56 = vpop.xlane.xlu1 %156 }
  0xc7   :  { %v194_v60 = vrot.slane %v157_v56, %v803_v6 }
  0xc8   :  { %v154_v57 = vpop.xlane.xlu0 %153 }
  0xc9   :  { %v190_v59 = vrot.slane %v154_v57, %v803_v6 }
  0xca   :  { %v160_v61 = vpop.xlane.xlu1 %159 }
  0xcb   :  { %v216_v62 = vsel %vm215_vm1, %v190_v59, %v186_v58  ;;  %v198_v63 = vrot.slane %v160_v61, %v803_v6 }
  0xcc   :  { %v218_v0 = vsel %vm217_vm2, %v194_v60, %v216_v62  ;;  %v163_v1 = vpop.xlane.xlu0 %162 }
  0xcd   :  { %v220_v2 = vsel %vm219_vm3, %v198_v63, %v218_v0  ;;  %v202_v4 = vrot.slane %v163_v1, %v803_v6 }
  0xce   :  { %v166_v5 = vpop.xlane.xlu1 %165 }
  0xcf   :  { %v222_v7 = vsel %vm221_vm4, %v202_v4, %v220_v2  ;;  %v206_v8 = vrot.slane %v166_v5, %v803_v6 }
  0xd0   :  { %v169_v9 = vpop.xlane.xlu0 %168 }
  0xd1   :  { %v210_v10 = vrot.slane %v169_v9, %v803_v6  ;;  %v224_v12 = vsel %vm223_vm5, %v206_v8, %v222_v7 }
  0xd2   :  { %v172_v13 = vpop.xlane.xlu1 %171 }
  0xd3   :  { %v214_v14 = vrot.slane %v172_v13, %v803_v6  ;;  %v226_v16 = vsel %vm225_vm6, %v210_v10, %v224_v12 }
  0xd5   :  { %v228_v17 = vsel %vm227_vm7, %v214_v14, %v226_v16 }
  0xd6   :  { %v231_v18 = vsel %vm230_vm8, %v228_v17, -inf }
  0xd7   :  { %232 = vmax.xlane.f32.xlu0 %v231_v18 }
 0x164   :  { %v233_v25 = vpop.xlane.xlu0 %232 }
 0x165   :  { %v238_v26 = vrot.slane %v233_v25, %v807_v11  ;;  %v242_v29 = vrot.slane %v233_v25, %v241_v22  ;;  %v246_v30 = vrot.slane %v233_v25, %v245_v23  ;;  %v250_v32 = vrot.slane %v233_v25, %v249_v24 }
 0x166   :  { %v254_v40 = vrot.slane %v233_v25, %v253_v31  ;;  %v258_v45 = vrot.slane %v233_v25, %v257_v39  ;;  %v262_v50 = vrot.slane %v233_v25, %v261_v43 }
 0x167   :  { %v275_v33 = vsub.f32 %v151_v55, %v238_v26  ;;  %v276_v34 = vsub.f32 %v154_v57, %v242_v29  ;;  %v277_v35 = vsub.f32 %v157_v56, %v246_v30  ;;  %v278_v41 = vsub.f32 %v160_v61, %v250_v32 }
 0x168   :  { %v279_v46 = vsub.f32 %v163_v1, %v254_v40  ;;  %v280_v51 = vsub.f32 %v166_v5, %v258_v45  ;;  %v266_v55 = vrot.slane %v233_v25, %v265_v49  ;;  %v281_v56 = vsub.f32 %v169_v9, %v262_v50 }
 0x169   :  { %v283_v36 = vmul.f32 1.442695, %v275_v33  ;;  %v285_v38 = vmul.f32 1.442695, %v276_v34  ;;  %v287_v42 = vmul.f32 1.442695, %v277_v35 }
 0x16a   :  { %v289_v47 = vmul.f32 1.442695, %v278_v41  ;;  %v291_v52 = vmul.f32 1.442695, %v279_v46  ;;  %v293_v57 = vmul.f32 1.442695, %v280_v51  ;;  %v282_v59 = vsub.f32 %v172_v13, %v266_v55 }
 0x16b   :  { %627 = vpow2.f32 %v283_v36  ;;  %v295_v60 = vmul.f32 1.442695, %v281_v56 }
 0x16c   :  { %629 = vpow2.f32 %v285_v38  ;;  %v297_v62 = vmul.f32 1.442695, %v282_v59 }
 0x16d   :  { %631 = vpow2.f32 %v287_v42 }
 0x16e   :  { %633 = vpow2.f32 %v289_v47 }
 0x16f   :  { %635 = vpow2.f32 %v291_v52 }
 0x170   :  { %637 = vpow2.f32 %v293_v57 }
 0x171   :  { %639 = vpow2.f32 %v295_v60 }
 0x172   :  { %641 = vpow2.f32 %v297_v62 }
 0x175   :  { %v628_v53 = vpop.eup %627 }
 0x176   :  { %v630_v54 = vpop.eup %629  ;;  %308 = vperm.xlu1 %624, %v628_v53  }
 0x177   :  { %311 = vperm.xlu0 %625, %v630_v54   ;;  %v632_v58 = vpop.eup %631 }
 0x178   :  { %v634_v61 = vpop.eup %633 }
 0x179   :  { %v636_v63 = vpop.eup %635 }
 0x17a   :  { %314 = vperm.xlu1 %624, %v632_v58   ;;  %v638_v0 = vpop.eup %637 }
 0x17b   :  { %v640_v1 = vpop.eup %639 }
 0x17c   :  { %v642_v2 = vpop.eup %641 }
 0x17e   :  { %317 = vperm.xlu1 %624, %v634_v61  }
 0x182   :  { %320 = vperm.xlu1 %624, %v636_v63  }
 0x186   :  { %323 = vperm.xlu1 %624, %v638_v0  }
 0x18a   :  { %326 = vperm.xlu1 %624, %v640_v1  }
 0x18e   :  { %329 = vperm.xlu1 %624, %v642_v2  }
 0x1f5   :  { %v309_v4 = vpop.permute.xlu1 %308 }
 0x1f6   :  { %v312_v9 = vpop.permute.xlu0 %311  ;;  %v334_v13 = vrot.slane %v309_v4, %v803_v6 }
 0x1f7   :  { %v338_v12 = vrot.slane %v312_v9, %v803_v6 }
 0x1f9   :  { %v315_v5 = vpop.permute.xlu1 %314  ;;  %v363_v19 = vsel %vm215_vm1, %v338_v12, %v334_v13 }
 0x1fa   :  { %v342_v14 = vrot.slane %v315_v5, %v803_v6 }
 0x1fc   :  { %v364_v26 = vsel %vm217_vm2, %v342_v14, %v363_v19 }
 0x1fd   :  { %v318_v7 = vpop.permute.xlu1 %317 }
 0x1fe   :  { %v346_v16 = vrot.slane %v318_v7, %v803_v6 }
 0x200   :  { %v365_v30 = vsel %vm219_vm3, %v346_v16, %v364_v26 }
 0x201   :  { %v321_v8 = vpop.permute.xlu1 %320 }
 0x202   :  { %v350_v17 = vrot.slane %v321_v8, %v803_v6 }
 0x204   :  { %v366_v32 = vsel %vm221_vm4, %v350_v17, %v365_v30 }
 0x205   :  { %v324_v10 = vpop.permute.xlu1 %323 }
 0x206   :  { %v354_v25 = vrot.slane %v324_v10, %v803_v6 }
 0x208   :  { %v367_v34 = vsel %vm223_vm5, %v354_v25, %v366_v32 }
 0x209   :  { %v327_v18 = vpop.permute.xlu1 %326 }
 0x20a   :  { %v358_v29 = vrot.slane %v327_v18, %v803_v6 }
 0x20c   :  { %v368_v36 = vsel %vm225_vm6, %v358_v29, %v367_v34 }
 0x20d   :  { %v330_v33 = vpop.permute.xlu1 %329 }
 0x20e   :  { %v362_v35 = vrot.slane %v330_v33, %v803_v6 }
 0x210   :  { %v369_v38 = vsel %vm227_vm7, %v362_v35, %v368_v36 }
 0x211   :  { %v371_v40 = vsel %vm230_vm8, %v369_v38, 0.0 }
 0x212   :  { %372 = vadd.xlane.f32.xlu1 %v371_v40 }
 0x29f   :  { %v373_v41 = vpop.xlane.xlu1 %372 }
 0x2a0   :  { %643 = vrcp.f32 %v373_v41 }
 0x2aa   :  { %v644_v42 = vpop.eup %643 }
 0x2ab   :  { %v379_v45 = vrot.slane %v644_v42, %v807_v11  ;;  %v383_v47 = vrot.slane %v644_v42, %v241_v22  ;;  %v387_v51 = vrot.slane %v644_v42, %v245_v23  ;;  %v391_v55 = vrot.slane %v644_v42, %v249_v24 }
 0x2ac   :  { %v395_v57 = vrot.slane %v644_v42, %v253_v31  ;;  %v399_v22 = vrot.slane %v644_v42, %v257_v39  ;;  %v403_v23 = vrot.slane %v644_v42, %v261_v43  ;;  %v407_v24 = vrot.slane %v644_v42, %v265_v49 }
 0x2ad   :  { %v416_v46 = vmul.f32 %v628_v53, %v379_v45  ;;  %v417_v50 = vmul.f32 %v630_v54, %v383_v47  ;;  %v418_v52 = vmul.f32 %v632_v58, %v387_v51  ;;  %v419_v56 = vmul.f32 %v634_v61, %v391_v55 }
 0x2ae   :  { %v420_v11 = vmul.f32 %v636_v63, %v395_v57  ;;  %v421_v53 = vmul.f32 %v638_v0, %v399_v22  ;;  %v422_v54 = vmul.f32 %v640_v1, %v403_v23  ;;  %v423_v58 = vmul.f32 %v642_v2, %v407_v24 }
 0x2af   :  { %433 = vperm.xlu0 %625, %v416_v46  }
 0x2b3   :  { %436 = vperm.xlu0 %625, %v417_v50  }
 0x2b7   :  { %439 = vperm.xlu0 %625, %v418_v52  }
 0x2bb   :  { %442 = vperm.xlu0 %625, %v419_v56  }
 0x2bf   :  { %445 = vperm.xlu0 %625, %v420_v11  }
 0x2c3   :  { %448 = vperm.xlu0 %625, %v421_v53  }
 0x2c7   :  { %451 = vperm.xlu0 %625, %v422_v54  }
 0x2cb   :  { %454 = vperm.xlu0 %625, %v423_v58  }
 0x32e   :  { %v434_v59 = vpop.permute.xlu0 %433 }
 0x32f   :  { %v505_v61 = vmul.f32 %v434_v59, %v809_v15  ;;  %v459_v17 = vrot.slane %v434_v59, %v803_v6 }
 0x331   :  { %v513_v43 = vsel %vm148_vm0, %v505_v61, 0.0 }
 0x332   :  { %v437_v31 = vpop.permute.xlu0 %436  ;;  %v514_v2 = vrot.slane %v513_v43, 4 }
 0x333   :  { %v506_v60 = vmul.f32 %v437_v31, %v814_v21  ;;  %v463_v16 = vrot.slane %v437_v31, %v803_v6 }
 0x335   :  { %v520_v63 = vsel %vm148_vm0, %v506_v60, 0.0  ;;  %v488_v36 = vsel %vm215_vm1, %v463_v16, %v459_v17 }
 0x336   :  { %v440_v39 = vpop.permute.xlu0 %439  ;;  %v521_v1 = vrot.slane %v520_v63, 4 }
 0x337   :  { %v507_v62 = vmul.f32 %v440_v39, %v812_v20  ;;  %v515_v20 = vadd.f32 %v514_v2, %v513_v43  ;;  %v467_v19 = vrot.slane %v440_v39, %v803_v6 }
 0x338   :  { %v522_v8 = vadd.f32 %v521_v1, %v520_v63 }
 0x339   :  { %v527_v0 = vsel %vm148_vm0, %v507_v62, 0.0  ;;  %v516_v26 = vrot.slane %v515_v20, 2  ;;  %v489_v42 = vsel %vm217_vm2, %v467_v19, %v488_v36 }
 0x33a   :  { %v443_v3 = vpop.permute.xlu0 %442  ;;  %v528_v4 = vrot.slane %v527_v0, 4  ;;  %v523_v18 = vrot.slane %v522_v8, 2 }
 0x33b   :  { %v508_v49 = vmul.f32 %v443_v3, %v821_v28  ;;  %v471_v29 = vrot.slane %v443_v3, %v803_v6  ;;  %v517_v47 = vadd.f32 %v516_v26, %v515_v20 }
 0x33c   :  { %v529_v9 = vadd.f32 %v528_v4, %v527_v0  ;;  %v524_v41 = vadd.f32 %v523_v18, %v522_v8 }
 0x33d   :  { %v534_v5 = vsel %vm148_vm0, %v508_v49, 0.0  ;;  %v490_v51 = vsel %vm219_vm3, %v471_v29, %v489_v42  ;;  %v518_v62 = vrot.slane %v517_v47, 1 }
 0x33e   :  { %v535_v21 = vrot.slane %v534_v5, 4  ;;  %v446_v7 = vpop.permute.xlu0 %445  ;;  %v525_v24 = vrot.slane %v524_v41, 1 }
 0x33f   :  { %v509_v15 = vmul.f32 %v446_v7, %v819_v27  ;;  %v530_v27 = vrot.slane %v529_v9, 2  ;;  %v475_v33 = vrot.slane %v446_v7, %v803_v6 }
 0x340   :  { %v536_v12 = vadd.f32 %v535_v21, %v534_v5 }
 0x341   :  { %v541_v10 = vsel %vm148_vm0, %v509_v15, 0.0  ;;  %v531_v50 = vadd.f32 %v530_v27, %v529_v9  ;;  %v491_v56 = vsel %vm221_vm4, %v475_v33, %v490_v51 }
 0x342   :  { %v542_v13 = vrot.slane %v541_v10, 4  ;;  %v449_v14 = vpop.permute.xlu0 %448  ;;  %v537_v32 = vrot.slane %v536_v12, 2 }
 0x343   :  { %v510_v28 = vmul.f32 %v449_v14, %v829_v37  ;;  %v479_v38 = vrot.slane %v449_v14, %v803_v6  ;;  %v532_v60 = vrot.slane %v531_v50, 1 }
 0x344   :  { %v543_v25 = vadd.f32 %v542_v13, %v541_v10  ;;  %v538_v55 = vadd.f32 %v537_v32, %v536_v12 }
 0x345   :  { %v548_v30 = vsel %vm148_vm0, %v510_v28, 0.0  ;;  %v492_v53 = vsel %vm223_vm5, %v479_v38, %v491_v56 }
 0x346   :  { %v549_v34 = vrot.slane %v548_v30, 4  ;;  %v452_v35 = vpop.permute.xlu0 %451  ;;  %v544_v37 = vrot.slane %v543_v25, 2  ;;  %v539_v63 = vrot.slane %v538_v55, 1 }
 0x347   :  { %v511_v40 = vmul.f32 %v452_v35, %v836_v44  ;;  %v483_v46 = vrot.slane %v452_v35, %v803_v6 }
 0x348   :  { %v550_v45 = vadd.f32 %v549_v34, %v548_v30  ;;  %v545_v22 = vadd.f32 %v544_v37, %v543_v25 }
 0x349   :  { %v555_v52 = vsel %vm148_vm0, %v511_v40, 0.0  ;;  %v493_v31 = vsel %vm225_vm6, %v483_v46, %v492_v53 }
 0x34a   :  { %v551_v57 = vrot.slane %v550_v45, 2  ;;  %v556_v11 = vrot.slane %v555_v52, 4  ;;  %v455_v44 = vpop.permute.xlu0 %454 }
 0x34b   :  { %v487_v23 = vrot.slane %v455_v44, %v803_v6  ;;  %v512_v54 = vmul.f32 %v455_v44, %v841_v48  ;;  %v546_v6 = vrot.slane %v545_v22, 1 }
 0x34c   :  { %v552_v58 = vadd.f32 %v551_v57, %v550_v45  ;;  %v557_v59 = vadd.f32 %v556_v11, %v555_v52 }
 0x34d   :  { %v562_v61 = vsel %vm148_vm0, %v512_v54, 0.0  ;;  %v494_v39 = vsel %vm227_vm7, %v487_v23, %v493_v31 }
 0x34e   :  { %v558_v43 = vrot.slane %v557_v59, 2  ;;  %v563_v0 = vrot.slane %v562_v61, 4  ;;  %496 = vst.msk [vmem:[#allocation8] sm:$0xff] %vm230_vm8, %v494_v39 }
 0x34f   :  { %700 = shalt.err (!%p697_p6)
}
 0x350   :  { %s701_s14 = scalar_lea.hbm %s985_s3, 128 }
 0x351   :  { %p702_p7 = scmp.ne.s32.totalorder %s985_s3, %s701_s14  ;;  %p705_p8 = scmp.lt.u32.totalorder %s701_s14, %s985_s3 }
 0x353   :  { %p707_p9 = pnand %p705_p8, %p702_p7 }
 0x355   :  { %710 = shalt.err (!%p707_p9)
}
 0x356   :  { %605 = dma.vmem_to_hbm [thread:$0]  %s603_s10, 128, %s985_s3, [#allocation9]   ;;  %v526_v48 = vadd.f32 %v525_v24, %v524_v41  ;;  %v553_v3 = vrot.slane %v552_v58, 1  ;;  %v559_v49 = vadd.f32 %v558_v43, %v557_v59  ;;  %v564_v1 = vadd.f32 %v563_v0, %v562_v61 }
 0x357   :  { %v533_v2 = vadd.f32 %v532_v60, %v531_v50  ;;  %v519_v4 = vadd.f32 %v518_v62, %v517_v47  ;;  %v540_v5 = vadd.f32 %v539_v63, %v538_v55  ;;  %v547_v15 = vadd.f32 %v546_v6, %v545_v22  ;;  %s748_s3 = smov [#allocation7]  }
 0x358   :  { %v560_v21 = vrot.slane %v559_v49, 1  ;;  %v565_v7 = vrot.slane %v564_v1, 2  ;;  %v554_v20 = vadd.f32 %v553_v3, %v552_v58  ;;  %s592_s21 = sshll.u32 %s748_s3, 4  ;;  %s593_s21 = int_to_ptr.vmem [resolvable:$true] %s592_s21 }
 0x359   :  { %v577_v8 = vsel %vm215_vm1, %v526_v48, %v519_v4  ;;  %s711_s22 = scalar_lea.vmem %s593_s21, 128  ;;  %p716_p11 = scmp.lt.s32.totalorder %s593_s21, %s593_s21 }
 0x35a   :  { %v566_v9 = vadd.f32 %v565_v7, %v564_v1  ;;  %v578_v10 = vsel %vm217_vm2, %v533_v2, %v577_v8  ;;  %v561_v12 = vadd.f32 %v560_v21, %v559_v49  ;;  %p712_p10 = scmp.ne.s32.totalorder %s593_s21, %s711_s22  ;;  %p717_p12 = scmp.lt.s32.totalorder %s711_s22, %s711_s22 }
 0x35b   :  { %v579_v14 = vsel %vm219_vm3, %v540_v5, %v578_v10 }
 0x35c   :  { %v567_v13 = vrot.slane %v566_v9, 1  ;;  %v580_v16 = vsel %vm221_vm4, %v547_v15, %v579_v14  ;;  %p718_p13 = por %p717_p12, %p716_p11 }
 0x35d   :  { %v581_v17 = vsel %vm223_vm5, %v554_v20, %v580_v16 }
 0x35e   :  { %v568_v28 = vadd.f32 %v567_v13, %v566_v9  ;;  %v582_v18 = vsel %vm225_vm6, %v561_v12, %v581_v17  ;;  %p719_p0 = pnand %p718_p13, %p712_p10 }
 0x360   :  { %v583_v19 = vsel %vm227_vm7, %v568_v28, %v582_v18 }
 0x361   :  { %585 = vst.msk [vmem:[#allocation7] sm:$0xff] %vm148_vm0, %v583_v19 }
 0x362   :  { %722 = shalt.err (!%p719_p0)
}
 0x363   :  { %s723_s25 = scalar_lea.hbm %s984_s2, 128 }
 0x364   :  { %p724_p1 = scmp.ne.s32.totalorder %s984_s2, %s723_s25  ;;  %p727_p2 = scmp.lt.u32.totalorder %s723_s25, %s984_s2 }
 0x366   :  { %p729_p3 = pnand %p727_p2, %p724_p1 }
 0x368   :  { %732 = shalt.err (!%p729_p3)
}
 0x369   :  { %595 = dma.vmem_to_hbm [thread:$0]  %s593_s21, 128, %s984_s2, [#allocation4]  }
 0x36a   :  { %737 = dma.done.wait [#allocation4], 128  }
 0x36b   :  { %738 = vsyncadd [#allocation4], 4294967168 }
 0x36c   :  { %739 = dma.done.wait [#allocation9], 128  }
 0x36d   :  { %740 = vsyncadd [#allocation9], 4294967168 }
 0x36e   :  { %612 = vsyncpa [#allocation3], 1 }
 0x36f   :  { %613 = vsyncpa [#allocation6], 1 }
 0x370   :  { %614 = vsyncpa [#allocation4], 1 }
 0x371   :  { %615 = vsyncpa [#allocation9], 1 }

</bundles_post_ra>
